<compile_context>
chip_gen: v5e
topology: v5e:2x2
jax: 0.10.0
libtpu: 0.0.40
codegen_flags: <defaults>
</compile_context>

<pallas_src>
import jax
import jax.numpy as jnp
from jax import lax
from jax.experimental import pallas as pl
from jax.experimental.pallas import tpu as pltpu


def _round_up(x, m):
    return ((x + m - 1) // m) * m


def _make_kernel(shifts, n_out, p_cols):
    """Fused conv (9 shifted matmuls) + tanh-GELU epilogue, one image per call."""

    def kernel(x_ref, w_ref, b_ref, o_ref):
        # x_ref: (1, Cp, L)    zero-padded, spatially-flattened input (one image)
        # w_ref: (KH*KW, O, Cp) per-tap weight matrices
        # b_ref: (O, 1)        bias column
        # o_ref: (1, O, P)     channel-major, lane-dense output
        acc = jnp.zeros((n_out, p_cols), jnp.float32)
        for k, s in enumerate(shifts):
            xs = x_ref[0, :, pl.ds(s, p_cols)]            # (Cp, P) shifted view
            acc = acc + jnp.dot(w_ref[k], xs,
                                preferred_element_type=jnp.float32)
        v1 = acc + b_ref[...]                             # (O,1) broadcasts over P
        v2 = v1 * 0.5
        v3 = v1 * 0.044715
        v4 = v2 * v1
        v5 = v3 * v4
        v6 = v5 + v1
        v7 = v6 * 0.7978845608028654
        v8 = jnp.tanh(v7)
        v9 = v8 + 1.0
        o_ref[0] = (v2 * v9).astype(o_ref.dtype)

    return kernel


@jax.jit
def conv_gelu_pallas(x_nchw, weight, bias):
    """x_nchw: (N, 3, H, W) f32; weight: (8, 3, 3, 3); bias: (8,). Returns NCHW."""
    N, C, H, W = x_nchw.shape
    O, _, KH, KW = weight.shape

    Hp, Wp = H + KH - 1, W + KW - 1        # spatial dims after padding=1
    Pv = Hp * Wp                           # valid flattened padded length
    P = _round_up(Pv, 128)                 # lane-dense output columns
    s_max = (KH - 1) * Wp + (KW - 1)       # largest shift used by the conv
    L = _round_up(P + s_max, 128)          # flattened input length incl. halo
    Cp = _round_up(C, 8)                   # sublane-align channel dim

    # --- cheap wrapper glue: zero-pad (conv halo + channel pad), flatten spatial ---
    xp = jnp.pad(x_nchw, ((0, 0), (0, Cp - C), (1, 1), (1, 1)))   # (N, Cp, Hp, Wp)
    xf = xp.reshape(N, Cp, Pv)
    xf = jnp.pad(xf, ((0, 0), (0, 0), (0, L - Pv)))               # (N, Cp, L)

    # weights: (O, C, KH, KW) -> (KH*KW, O, Cp); bias as a column
    w_k = jnp.transpose(weight, (2, 3, 0, 1)).reshape(KH * KW, O, C)
    w_k = jnp.pad(w_k, ((0, 0), (0, 0), (0, Cp - C)))
    b_col = bias.reshape(O, 1)

    # shift of each conv tap in flattened padded coordinates
    shifts = tuple(dh * Wp + dw for dh in range(KH) for dw in range(KW))
    kernel = _make_kernel(shifts, O, P)

    out_full = pl.pallas_call(
        kernel,
        out_shape=jax.ShapeDtypeStruct((N, O, P), jnp.float32),
        grid_spec=pltpu.PrefetchScalarGridSpec(
            num_scalar_prefetch=0,
            grid=(N,),                                     # one image per step
            in_specs=[
                pl.BlockSpec((1, Cp, L), lambda n: (n, 0, 0)),       # input slab
                pl.BlockSpec((KH * KW, O, Cp), lambda n: (0, 0, 0)),  # weights
                pl.BlockSpec((O, 1), lambda n: (0, 0)),               # bias
            ],
            out_specs=pl.BlockSpec((1, O, P), lambda n: (n, 0, 0)),
        ),
        compiler_params=pltpu.CompilerParams(
            dimension_semantics=("parallel",),             # megacore-shardable on v7x
        ),
    )(xf, w_k, b_col)

    # valid outputs live at p = h*Wp + w (h<H, w<W); already NCHW-major.
    out = out_full[:, :, :Pv].reshape(N, O, Hp, Wp)[:, :, :H, :W]
    return out


def _reference(x_nchw, weight, bias):
    v1 = lax.conv_general_dilated(
        x_nchw, weight, window_strides=(1, 1), padding="SAME",
        dimension_numbers=("NCHW", "OIHW", "NCHW"),
    ) + bias.reshape(1, -1, 1, 1)
    v2 = v1 * 0.5
    v3 = v1 * 0.044715
    v4 = v2 * v1
    v5 = v3 * v4
    v6 = v5 + v1
    v7 = v6 * 0.7978845608028654
    v8 = jnp.tanh(v7)
    v9 = v8 + 1.0
    return v2 * v9


if __name__ == "__main__":
    key = jax.random.PRNGKey(0)
    kx, kw, kb = jax.random.split(key, 3)

    # small shapes consistent with the module: batch=2, C_in=3, 16x16 spatial
    N, C, H, W = 2, 3, 16, 16
    O, KH, KW = 8, 3, 3

    x = jax.random.normal(kx, (N, C, H, W), dtype=jnp.float32)

    # deterministic param init (kaiming-uniform-like bounds of PyTorch Conv2d)
    fan_in = C * KH * KW
    bound = 1.0 / (fan_in ** 0.5)
    weight = jax.random.uniform(kw, (O, C, KH, KW), jnp.float32, -bound, bound)
    bias = jax.random.uniform(kb, (O,), jnp.float32, -bound, bound)

    out = conv_gelu_pallas(x, weight, bias)
    out = jax.block_until_ready(out)

    ref = _reference(x, weight, bias)
    assert out.shape == (N, O, H, W)
    assert jnp.allclose(out, ref, atol=1e-4, rtol=1e-4)

    print("KERNEL_OK")
</pallas_src>

<mosaic_0001>
module attributes {stable_mosaic.version = 11 : i64} {
  func.func @kernel(%arg0: i32, %arg1: memref<1x8x512xf32, #tpu.memory_space<vmem>>, %arg2: memref<9x8x8xf32, #tpu.memory_space<vmem>>, %arg3: memref<8x1xf32, #tpu.memory_space<vmem>>, %arg4: memref<1x8x384xf32, #tpu.memory_space<vmem>>) attributes {dimension_semantics = [#tpu.dimension_semantics<parallel>], iteration_bounds = array<i64: 2>, scalar_prefetch = 0 : i64, scratch_operands = 0 : i64, tpu.core_type = #tpu.core_type<tc>, window_params = [{transform_indices = @transform_0, window_bounds = array<i64: 1, 8, 512>}, {pipeline_mode = #tpu.pipeline_mode<synchronous>, transform_indices = @transform_1, window_bounds = array<i64: 9, 8, 8>}, {pipeline_mode = #tpu.pipeline_mode<synchronous>, transform_indices = @transform_2, window_bounds = array<i64: 8, 1>}, {transform_indices = @transform_3, window_bounds = array<i64: 1, 8, 384>}]} {
    %cst = arith.constant 0.000000e+00 : f32
    %0 = vector.broadcast %cst : f32 to vector<8x384xf32>
    %c0 = arith.constant 0 : index
    %c0_0 = arith.constant 0 : index
    %c0_1 = arith.constant 0 : index
    %1 = vector.load %arg1[%c0, %c0_0, %c0_1] : memref<1x8x512xf32, #tpu.memory_space<vmem>>, vector<1x8x384xf32>
    %2 = vector.shape_cast %1 : vector<1x8x384xf32> to vector<8x384xf32>
    %c0_2 = arith.constant 0 : index
    %c0_3 = arith.constant 0 : index
    %c0_4 = arith.constant 0 : index
    %3 = vector.load %arg2[%c0_2, %c0_3, %c0_4] : memref<9x8x8xf32, #tpu.memory_space<vmem>>, vector<1x8x8xf32>
    %4 = vector.shape_cast %3 : vector<1x8x8xf32> to vector<8x8xf32>
    %cst_5 = arith.constant dense<0.000000e+00> : vector<8x384xf32>
    %5 = tpu.matmul %4, %2, %cst_5 {dimension_numbers = #tpu.dot_dimension_numbers<[1], [0], [0], [1], [0, 0, 1, 1], [], []>} : vector<8x8xf32>, vector<8x384xf32>, vector<8x384xf32> -> vector<8x384xf32>
    %6 = arith.addf %0, %5 : vector<8x384xf32>
    %c0_6 = arith.constant 0 : index
    %c0_7 = arith.constant 0 : index
    %c1 = arith.constant 1 : index
    %7 = vector.load %arg1[%c0_6, %c0_7, %c1] : memref<1x8x512xf32, #tpu.memory_space<vmem>>, vector<1x8x384xf32>
    %8 = vector.shape_cast %7 : vector<1x8x384xf32> to vector<8x384xf32>
    %c1_8 = arith.constant 1 : index
    %c0_9 = arith.constant 0 : index
    %c0_10 = arith.constant 0 : index
    %9 = vector.load %arg2[%c1_8, %c0_9, %c0_10] : memref<9x8x8xf32, #tpu.memory_space<vmem>>, vector<1x8x8xf32>
    %10 = vector.shape_cast %9 : vector<1x8x8xf32> to vector<8x8xf32>
    %cst_11 = arith.constant dense<0.000000e+00> : vector<8x384xf32>
    %11 = tpu.matmul %10, %8, %cst_11 {dimension_numbers = #tpu.dot_dimension_numbers<[1], [0], [0], [1], [0, 0, 1, 1], [], []>} : vector<8x8xf32>, vector<8x384xf32>, vector<8x384xf32> -> vector<8x384xf32>
    %12 = arith.addf %6, %11 : vector<8x384xf32>
    %c0_12 = arith.constant 0 : index
    %c0_13 = arith.constant 0 : index
    %c2 = arith.constant 2 : index
    %13 = vector.load %arg1[%c0_12, %c0_13, %c2] : memref<1x8x512xf32, #tpu.memory_space<vmem>>, vector<1x8x384xf32>
    %14 = vector.shape_cast %13 : vector<1x8x384xf32> to vector<8x384xf32>
    %c2_14 = arith.constant 2 : index
    %c0_15 = arith.constant 0 : index
    %c0_16 = arith.constant 0 : index
    %15 = vector.load %arg2[%c2_14, %c0_15, %c0_16] : memref<9x8x8xf32, #tpu.memory_space<vmem>>, vector<1x8x8xf32>
    %16 = vector.shape_cast %15 : vector<1x8x8xf32> to vector<8x8xf32>
    %cst_17 = arith.constant dense<0.000000e+00> : vector<8x384xf32>
    %17 = tpu.matmul %16, %14, %cst_17 {dimension_numbers = #tpu.dot_dimension_numbers<[1], [0], [0], [1], [0, 0, 1, 1], [], []>} : vector<8x8xf32>, vector<8x384xf32>, vector<8x384xf32> -> vector<8x384xf32>
    %18 = arith.addf %12, %17 : vector<8x384xf32>
    %c0_18 = arith.constant 0 : index
    %c0_19 = arith.constant 0 : index
    %c18 = arith.constant 18 : index
    %19 = vector.load %arg1[%c0_18, %c0_19, %c18] : memref<1x8x512xf32, #tpu.memory_space<vmem>>, vector<1x8x384xf32>
    %20 = vector.shape_cast %19 : vector<1x8x384xf32> to vector<8x384xf32>
    %c3 = arith.constant 3 : index
    %c0_20 = arith.constant 0 : index
    %c0_21 = arith.constant 0 : index
    %21 = vector.load %arg2[%c3, %c0_20, %c0_21] : memref<9x8x8xf32, #tpu.memory_space<vmem>>, vector<1x8x8xf32>
    %22 = vector.shape_cast %21 : vector<1x8x8xf32> to vector<8x8xf32>
    %cst_22 = arith.constant dense<0.000000e+00> : vector<8x384xf32>
    %23 = tpu.matmul %22, %20, %cst_22 {dimension_numbers = #tpu.dot_dimension_numbers<[1], [0], [0], [1], [0, 0, 1, 1], [], []>} : vector<8x8xf32>, vector<8x384xf32>, vector<8x384xf32> -> vector<8x384xf32>
    %24 = arith.addf %18, %23 : vector<8x384xf32>
    %c0_23 = arith.constant 0 : index
    %c0_24 = arith.constant 0 : index
    %c19 = arith.constant 19 : index
    %25 = vector.load %arg1[%c0_23, %c0_24, %c19] : memref<1x8x512xf32, #tpu.memory_space<vmem>>, vector<1x8x384xf32>
    %26 = vector.shape_cast %25 : vector<1x8x384xf32> to vector<8x384xf32>
    %c4 = arith.constant 4 : index
    %c0_25 = arith.constant 0 : index
    %c0_26 = arith.constant 0 : index
    %27 = vector.load %arg2[%c4, %c0_25, %c0_26] : memref<9x8x8xf32, #tpu.memory_space<vmem>>, vector<1x8x8xf32>
    %28 = vector.shape_cast %27 : vector<1x8x8xf32> to vector<8x8xf32>
    %cst_27 = arith.constant dense<0.000000e+00> : vector<8x384xf32>
    %29 = tpu.matmul %28, %26, %cst_27 {dimension_numbers = #tpu.dot_dimension_numbers<[1], [0], [0], [1], [0, 0, 1, 1], [], []>} : vector<8x8xf32>, vector<8x384xf32>, vector<8x384xf32> -> vector<8x384xf32>
    %30 = arith.addf %24, %29 : vector<8x384xf32>
    %c0_28 = arith.constant 0 : index
    %c0_29 = arith.constant 0 : index
    %c20 = arith.constant 20 : index
    %31 = vector.load %arg1[%c0_28, %c0_29, %c20] : memref<1x8x512xf32, #tpu.memory_space<vmem>>, vector<1x8x384xf32>
    %32 = vector.shape_cast %31 : vector<1x8x384xf32> to vector<8x384xf32>
    %c5 = arith.constant 5 : index
    %c0_30 = arith.constant 0 : index
    %c0_31 = arith.constant 0 : index
    %33 = vector.load %arg2[%c5, %c0_30, %c0_31] : memref<9x8x8xf32, #tpu.memory_space<vmem>>, vector<1x8x8xf32>
    %34 = vector.shape_cast %33 : vector<1x8x8xf32> to vector<8x8xf32>
    %cst_32 = arith.constant dense<0.000000e+00> : vector<8x384xf32>
    %35 = tpu.matmul %34, %32, %cst_32 {dimension_numbers = #tpu.dot_dimension_numbers<[1], [0], [0], [1], [0, 0, 1, 1], [], []>} : vector<8x8xf32>, vector<8x384xf32>, vector<8x384xf32> -> vector<8x384xf32>
    %36 = arith.addf %30, %35 : vector<8x384xf32>
    %c0_33 = arith.constant 0 : index
    %c0_34 = arith.constant 0 : index
    %c36 = arith.constant 36 : index
    %37 = vector.load %arg1[%c0_33, %c0_34, %c36] : memref<1x8x512xf32, #tpu.memory_space<vmem>>, vector<1x8x384xf32>
    %38 = vector.shape_cast %37 : vector<1x8x384xf32> to vector<8x384xf32>
    %c6 = arith.constant 6 : index
    %c0_35 = arith.constant 0 : index
    %c0_36 = arith.constant 0 : index
    %39 = vector.load %arg2[%c6, %c0_35, %c0_36] : memref<9x8x8xf32, #tpu.memory_space<vmem>>, vector<1x8x8xf32>
    %40 = vector.shape_cast %39 : vector<1x8x8xf32> to vector<8x8xf32>
    %cst_37 = arith.constant dense<0.000000e+00> : vector<8x384xf32>
    %41 = tpu.matmul %40, %38, %cst_37 {dimension_numbers = #tpu.dot_dimension_numbers<[1], [0], [0], [1], [0, 0, 1, 1], [], []>} : vector<8x8xf32>, vector<8x384xf32>, vector<8x384xf32> -> vector<8x384xf32>
    %42 = arith.addf %36, %41 : vector<8x384xf32>
    %c0_38 = arith.constant 0 : index
    %c0_39 = arith.constant 0 : index
    %c37 = arith.constant 37 : index
    %43 = vector.load %arg1[%c0_38, %c0_39, %c37] : memref<1x8x512xf32, #tpu.memory_space<vmem>>, vector<1x8x384xf32>
    %44 = vector.shape_cast %43 : vector<1x8x384xf32> to vector<8x384xf32>
    %c7 = arith.constant 7 : index
    %c0_40 = arith.constant 0 : index
    %c0_41 = arith.constant 0 : index
    %45 = vector.load %arg2[%c7, %c0_40, %c0_41] : memref<9x8x8xf32, #tpu.memory_space<vmem>>, vector<1x8x8xf32>
    %46 = vector.shape_cast %45 : vector<1x8x8xf32> to vector<8x8xf32>
    %cst_42 = arith.constant dense<0.000000e+00> : vector<8x384xf32>
    %47 = tpu.matmul %46, %44, %cst_42 {dimension_numbers = #tpu.dot_dimension_numbers<[1], [0], [0], [1], [0, 0, 1, 1], [], []>} : vector<8x8xf32>, vector<8x384xf32>, vector<8x384xf32> -> vector<8x384xf32>
    %48 = arith.addf %42, %47 : vector<8x384xf32>
    %c0_43 = arith.constant 0 : index
    %c0_44 = arith.constant 0 : index
    %c38 = arith.constant 38 : index
    %49 = vector.load %arg1[%c0_43, %c0_44, %c38] : memref<1x8x512xf32, #tpu.memory_space<vmem>>, vector<1x8x384xf32>
    %50 = vector.shape_cast %49 : vector<1x8x384xf32> to vector<8x384xf32>
    %c8 = arith.constant 8 : index
    %c0_45 = arith.constant 0 : index
    %c0_46 = arith.constant 0 : index
    %51 = vector.load %arg2[%c8, %c0_45, %c0_46] : memref<9x8x8xf32, #tpu.memory_space<vmem>>, vector<1x8x8xf32>
    %52 = vector.shape_cast %51 : vector<1x8x8xf32> to vector<8x8xf32>
    %cst_47 = arith.constant dense<0.000000e+00> : vector<8x384xf32>
    %53 = tpu.matmul %52, %50, %cst_47 {dimension_numbers = #tpu.dot_dimension_numbers<[1], [0], [0], [1], [0, 0, 1, 1], [], []>} : vector<8x8xf32>, vector<8x384xf32>, vector<8x384xf32> -> vector<8x384xf32>
    %54 = arith.addf %48, %53 : vector<8x384xf32>
    %c0_48 = arith.constant 0 : index
    %c0_49 = arith.constant 0 : index
    %55 = vector.load %arg3[%c0_48, %c0_49] : memref<8x1xf32, #tpu.memory_space<vmem>>, vector<8x1xf32>
    %56 = vector.broadcast %55 : vector<8x1xf32> to vector<8x384xf32>
    %57 = arith.addf %54, %56 : vector<8x384xf32>
    %cst_50 = arith.constant 5.000000e-01 : f32
    %58 = vector.broadcast %cst_50 : f32 to vector<8x384xf32>
    %59 = arith.mulf %57, %58 : vector<8x384xf32>
    %cst_51 = arith.constant 4.471500e-02 : f32
    %60 = vector.broadcast %cst_51 : f32 to vector<8x384xf32>
    %61 = arith.mulf %57, %60 : vector<8x384xf32>
    %62 = arith.mulf %59, %57 : vector<8x384xf32>
    %63 = arith.mulf %61, %62 : vector<8x384xf32>
    %64 = arith.addf %63, %57 : vector<8x384xf32>
    %cst_52 = arith.constant 0.797884583 : f32
    %65 = vector.broadcast %cst_52 : f32 to vector<8x384xf32>
    %66 = arith.mulf %64, %65 : vector<8x384xf32>
    %67 = math.tanh %66 : vector<8x384xf32>
    %cst_53 = arith.constant 1.000000e+00 : f32
    %68 = vector.broadcast %cst_53 : f32 to vector<8x384xf32>
    %69 = arith.addf %67, %68 : vector<8x384xf32>
    %70 = arith.mulf %59, %69 : vector<8x384xf32>
    %c0_54 = arith.constant 0 : index
    %c0_55 = arith.constant 0 : index
    %c0_56 = arith.constant 0 : index
    %71 = vector.load %arg4[%c0_54, %c0_55, %c0_56] : memref<1x8x384xf32, #tpu.memory_space<vmem>>, vector<1x8x384xf32>
    %72 = vector.shape_cast %71 : vector<1x8x384xf32> to vector<8x384xf32>
    %73 = vector.shape_cast %70 : vector<8x384xf32> to vector<1x8x384xf32>
    tpu.vector_store %arg4[%c0_54, %c0_55, %c0_56], %73 {strides = array<i32>} : memref<1x8x384xf32, #tpu.memory_space<vmem>>, vector<1x8x384xf32>,
    return
  }
  func.func @transform_0(%arg0: i32) -> (i32, i32, i32) {
    %c0_i32 = arith.constant 0 : i32
    %c0_i32_0 = arith.constant 0 : i32
    %c0_i32_1 = arith.constant 0 : i32
    return %arg0, %c0_i32, %c0_i32_0 : i32, i32, i32
  }
  func.func @transform_1(%arg0: i32) -> (i32, i32, i32) {
    %c0_i32 = arith.constant 0 : i32
    %c0_i32_0 = arith.constant 0 : i32
    %c0_i32_1 = arith.constant 0 : i32
    %c0_i32_2 = arith.constant 0 : i32
    return %c0_i32, %c0_i32_0, %c0_i32_1 : i32, i32, i32
  }
  func.func @transform_2(%arg0: i32) -> (i32, i32) {
    %c0_i32 = arith.constant 0 : i32
    %c0_i32_0 = arith.constant 0 : i32
    %c0_i32_1 = arith.constant 0 : i32
    return %c0_i32, %c0_i32_0 : i32, i32
  }
  func.func @transform_3(%arg0: i32) -> (i32, i32, i32) {
    %c0_i32 = arith.constant 0 : i32
    %c0_i32_0 = arith.constant 0 : i32
    %c0_i32_1 = arith.constant 0 : i32
    return %arg0, %c0_i32, %c0_i32_0 : i32, i32, i32
  }
}

</mosaic_0001>

<bundles_post_ra>
// kernel: conv_gelu_pallas.1
= control target key start
LH: loop header
LB: loop body
LE: loop exit
PB: predicated region body
PF: predicated region fallthrough
CT: control target
= control target key end

     0   :  { %s1191_s12 = smov 0   ;;  %s1305_s0 = inlined_call_operand.vmem [shape: f32[2,8,512], index: 0, kind: input, shape index: {}]   ;;  %s1306_s1 = inlined_call_operand.vmem [shape: f32[9,8,8], index: 1, kind: input, shape index: {}]   ;;  %s1307_s2 = inlined_call_operand.vmem [shape: f32[8,1], index: 2, kind: input, shape index: {}]   ;;  %s1308_s3 = inlined_call_operand.vmem [shape: f32[2,8,384], index: 3, kind: output, shape index: {}]  }
   0x1 LB: > { %s1002_s13 = sadd.s32 4294967295, %s1160_s12   ;;  %p1006_p0 = scmp.ge.s32.totalorder %s1160_s12, 1  ;;  %s1160_s12 = sphi %s1191_s12, %s13_s12  }
   0x2   : > { %p137_p1 = scmp.lt.s32.totalorder %s1160_s12, 3 }
   0x4   : > { %p138_p2 = pnand %p1006_p0, %p137_p1 }
   0x5   : > { %p161_p3 = scmp.lt.s32.totalorder (!%p138_p2), %s1002_s13, 1  ;;  %s1162_s18 = smov (!%p138_p2), 127  }
   0x6   : > { %141 = sbr.rel (%p138_p2) target bundleno = 346 (0x15a), region = 32  ;;  %s1163_s19 = smov (!%p138_p2), 126  }
   0x7   : > { %s1164_s20 = smov (!%p138_p2), 110   ;;  %s1165_s21 = smov (!%p138_p2), 109  }
   0x8   : > { %s1166_s22 = smov (!%p138_p2), 108   ;;  %s1167_s23 = smov (!%p138_p2), 92  }
   0x9   : > { %s1168_s24 = smov (!%p138_p2), 91   ;;  %s1169_s25 = smov (!%p138_p2), 90  }
   0xb   : > { %s1310_s13 = smov (!%p161_p3, %s1002_s13), 1  ;;  %vm200_vm0 = vcmask 64512   ;;  %v1216_v8 = vld [vmem:[%s1306_s1] sm:$0xff]  ;;  %vm193_vm1 = vcmask 1039360   ;;  %vm337_vm2 = vcmask 1031168   ;;  %vm420_vm3 = vcmask 900096  }
   0xc   : > { %s1047_s14 = sshll.u32 %s1310_s13, 5  ;;  %v1010_v18 = vld [vmem:[%s1306_s1 + $0x8] sm:$0xff]  ;;  %v1017_v37 = vld [vmem:[%s1306_s1 + $0x10] sm:$0xff]  ;;  %vm586_vm4 = vcmask 883712   ;;  %vm503_vm5 = vcmask 891904   ;;  %v1021_v49 = vld [vmem:[%s1306_s1 + $0x18] sm:$0xff] }
   0xd   : > { %s165_s17 = scalar_lea.vmem %s1305_s0, %s1047_s14  ;;  %vm669_vm6 = vcmask 752640   ;;  %v1025_v62 = vld [vmem:[%s1306_s1 + $0x20] sm:$0xff]  ;;  %vm752_vm7 = vcmask 744448   ;;  %vm835_vm8 = vcmask 736256  }
   0xe   : > { %v1205_v0 = vld [vmem:[%s165_s17 + $0x10] sm:$0xff]  ;;  %v178_v1 = vld [vmem:[%s165_s17 + $0x18] sm:$0xff]  ;;  %v175_v2 = vld [vmem:[%s165_s17] sm:$0xff] }
   0xf   : > { %v1066_v3 = vpack.i.bf16 %v178_v1, %v1205_v0  ;;  %v1208_v4 = vld [vmem:[%s165_s17 + $0x8] sm:$0xff]  ;;  %282 = vmatpush.msra.mxu3 %v175_v2  ;;  %v1091_v7 = vpack.i.bf16 %v178_v1, %v175_v2 }
  0x10   : > { %v1076_v5 = vpack.i.bf16 %v1208_v4, %v175_v2  ;;  %v1086_v6 = vpack.i.bf16 %v1205_v0, %v1208_v4  ;;  %1014 = vmatmul.msk.f32.vlgmr.msra.gmra.mxu3 %vm200_vm0, %v1216_v8  ;;  %v1029_v1 = vld [vmem:[%s1306_s1 + $0x28] sm:$0xff] }
  0x11   : > { %1067 = vrot.lane.b32.xlu0 %v1066_v3, %s1162_s18 }
  0x12   : > { %1077 = vrot.lane.b32.xlu1 %v1076_v5, %s1163_s19  ;;  %1087 = vrot.lane.b32.xlu2 %v1086_v6, %s1164_s20 }
  0x19   : > { %1072 = vrot.lane.b32.xlu0 %v1076_v5, %s1162_s18 }
  0x1a   : > { %1082 = vrot.lane.b32.xlu1 %v1066_v3, %s1163_s19  ;;  %1092 = vrot.lane.b32.xlu2 %v1091_v7, %s1164_s20 }
  0x21   : > { %1097 = vrot.lane.b32.xlu0 %v1066_v3, %s1165_s21 }
  0x22   : > { %1102 = vrot.lane.b32.xlu1 %v1076_v5, %s1165_s21  ;;  %1107 = vrot.lane.b32.xlu2 %v1076_v5, %s1166_s22  ;;  %s1048_s21 = smul.u32 24, %s1310_s13 }
  0x29   : > { %1112 = vrot.lane.b32.xlu0 %v1076_v5, %s1167_s23 }
  0x2a   : > { %1117 = vrot.lane.b32.xlu1 %v1066_v3, %s1166_s22  ;;  %1122 = vrot.lane.b32.xlu2 %v1066_v3, %s1167_s23 }
  0x31   : > { %1127 = vrot.lane.b32.xlu0 %v1086_v6, %s1168_s24  ;;  %v1170_v6 = vmov 0  }
  0x32   : > { %1132 = vrot.lane.b32.xlu1 %v1091_v7, %s1168_s24  ;;  %1137 = vrot.lane.b32.xlu2 %v1066_v3, %s1169_s25  ;;  %v908_v3 = vld [vmem:[%s1307_s2] sm:$0xff]  ;;  %s170_s24 = scalar_lea.vmem %s1308_s3, %s1048_s21 }
  0x33   : > { %1146 = vset.pattern.permute.xlu1 %v1170_v6  ;;  %1147 = vset.pattern.permute.xlu0 %v1170_v6 }
  0x39   : > { %1142 = vrot.lane.b32.xlu0 %v1076_v5, %s1169_s25 }
  0x3a   : > { %911 = vperm.xlu1 %1146, %v908_v3  }
  0x6c   : > { %v1088_v9 = vpop.permute.xlu2 %1087 }
  0x6d   : > { %v1090_v11 = vunpack.i.h.bf16 %v1088_v9  ;;  %v1089_v12 = vunpack.i.l.bf16 %v1088_v9 }
  0x6f   : > { %v422_v22 = vsel %vm420_vm3, %v1089_v12, %v1090_v11 }
  0x74   : > { %v1093_v19 = vpop.permute.xlu2 %1092 }
  0x75   : > { %v1095_v27 = vunpack.i.h.bf16 %v1093_v19  ;;  %v1094_v30 = vunpack.i.l.bf16 %v1093_v19 }
  0x77   : > { %v423_v38 = vsel %vm420_vm3, %v1090_v11, %v1095_v27  ;;  %v421_v40 = vsel %vm420_vm3, %v1094_v30, %v1089_v12 }
  0x7c   : > { %v1108_v31 = vpop.permute.xlu2 %1107 }
  0x7d   : > { %v1110_v34 = vunpack.i.h.bf16 %v1108_v31  ;;  %v1109_v35 = vunpack.i.l.bf16 %v1108_v31 }
  0x7f   : > { %v587_v41 = vsel %vm586_vm4, %v1109_v35, %v1110_v34 }
  0x83   : > { %v1068_v10 = vpop.permute.xlu0 %1067 }
  0x84   : > { %v1070_v13 = vunpack.i.h.bf16 %v1068_v10  ;;  %v1069_v14 = vunpack.i.l.bf16 %v1068_v10  ;;  %v1078_v15 = vpop.permute.xlu1 %1077  ;;  %v1123_v51 = vpop.permute.xlu2 %1122 }
  0x85   : > { %v1080_v16 = vunpack.i.h.bf16 %v1078_v15  ;;  %v1079_v17 = vunpack.i.l.bf16 %v1078_v15  ;;  %v1124_v53 = vunpack.i.l.bf16 %v1123_v51 }
  0x86   : > { %v196_v20 = vsel %vm193_vm1, %v1069_v14, %v1070_v13 }
  0x87   : > { %259 = vmatpush.msra.mxu2 %v196_v20  ;;  %v338_v21 = vsel %vm337_vm2, %v1079_v17, %v1080_v16 }
  0x88   : > { %1013 = vmatmul.msk.f32.vlgmr.msra.gmra.mxu2 %vm200_vm0, %v1010_v18 }
  0x89   : > { %362 = vmatpush.msrb.mxu2 %v338_v21 }
  0x8b   : > { %465 = vmatpush.msra.mxu2 %v422_v22  ;;  %v1073_v23 = vpop.permute.xlu0 %1072 }
  0x8c   : > { %v1083_v24 = vpop.permute.xlu1 %1082  ;;  %v1075_v25 = vunpack.i.h.bf16 %v1073_v23  ;;  %v1074_v26 = vunpack.i.l.bf16 %v1073_v23  ;;  %v1138_v2 = vpop.permute.xlu2 %1137 }
  0x8d   : > { %v1085_v28 = vunpack.i.h.bf16 %v1083_v24  ;;  %v1084_v29 = vunpack.i.l.bf16 %v1083_v24  ;;  %v1140_v10 = vunpack.i.h.bf16 %v1138_v2  ;;  %v1139_v11 = vunpack.i.l.bf16 %v1138_v2  ;;  %v1037_v24 = vld [vmem:[%s1306_s1 + $0x38] sm:$0xff] }
  0x8e   : > { %v194_v32 = vsel %vm193_vm1, %v1074_v26, %v1075_v25  ;;  %v195_v33 = vsel %vm193_vm1, %v1075_v25, %v1069_v14  ;;  %v1041_v26 = vld [vmem:[%s1306_s1 + $0x40] sm:$0xff] }
  0x8f   : > { %219 = vmatpush.msra.mxu0 %v194_v32  ;;  %239 = vmatpush.msra.mxu1 %v195_v33  ;;  %v339_v36 = vsel %vm337_vm2, %v1080_v16, %v1084_v29  ;;  %v340_v39 = vsel %vm337_vm2, %v1084_v29, %v1085_v28  ;;  %v1033_v16 = vld [vmem:[%s1306_s1 + $0x30] sm:$0xff]  ;;  %v838_v19 = vsel %vm835_vm8, %v1139_v11, %v1140_v10 }
  0x90   : > { %382 = vmatpush.msrb.mxu3 %v339_v36  ;;  %1011 = vmatmul.msk.f32.vlgmr.msra.gmra.mxu0 %vm200_vm0, %v1010_v18 }
  0x91   : > { %1012 = vmatmul.msk.f32.vlgmr.msra.gmra.mxu1 %vm200_vm0, %v1010_v18  ;;  %302 = vmatpush.msrb.mxu0 %v1208_v4  ;;  %v1125_v4 = vunpack.i.h.bf16 %v1123_v51 }
  0x92   : > { %322 = vmatpush.msrb.mxu1 %v1205_v0  ;;  %1018 = vmatmul.msk.f32.vlgmr.msrb.gmra.mxu2 %vm200_vm0, %v1017_v37 }
  0x93   : > { %485 = vmatpush.msra.mxu3 %v423_v38  ;;  %402 = vmatpush.msra.mxu0 %v340_v39  ;;  %v1098_v42 = vpop.permute.xlu0 %1097  ;;  %v672_v14 = vsel %vm669_vm6, %v1124_v53, %v1125_v4  ;;  %v284_v30 = vpop.f32.mrf.mxu3 }
  0x94   : > { %445 = vmatpush.msra.mxu1 %v421_v40  ;;  %v1103_v43 = vpop.permute.xlu1 %1102  ;;  %1019 = vmatmul.msk.f32.vlgmr.msrb.gmra.mxu3 %vm200_vm0, %v1017_v37  ;;  %v1100_v44 = vunpack.i.h.bf16 %v1098_v42  ;;  %v1099_v45 = vunpack.i.l.bf16 %v1098_v42 }
  0x95   : > { %v1105_v46 = vunpack.i.h.bf16 %v1103_v43  ;;  %v1104_v47 = vunpack.i.l.bf16 %v1103_v43  ;;  %611 = vmatpush.msrb.mxu3 %v587_v41 }
  0x96   : > { %v506_v48 = vsel %vm503_vm5, %v1099_v45, %v1100_v44 }
  0x97   : > { %v505_v50 = vsel %vm503_vm5, %v1105_v46, %v1099_v45  ;;  %568 = vmatpush.msrb.mxu2 %v506_v48  ;;  %v504_v52 = vsel %vm503_vm5, %v1104_v47, %v1105_v46 }
  0x98   : > { %1015 = vmatmul.msk.f32.vlgmr.msrb.gmra.mxu0 %vm200_vm0, %v1216_v8 }
  0x99   : > { %1016 = vmatmul.msk.f32.vlgmr.msrb.gmra.mxu1 %vm200_vm0, %v1216_v8  ;;  %528 = vmatpush.msrb.mxu0 %v504_v52 }
  0x9a   : > { %1023 = vmatmul.msk.f32.vlgmr.msra.gmra.mxu2 %vm200_vm0, %v1021_v49  ;;  %548 = vmatpush.msrb.mxu1 %v505_v50 }
  0x9b   : > { %v1113_v54 = vpop.permute.xlu0 %1112 }
  0x9c   : > { %v1118_v55 = vpop.permute.xlu1 %1117  ;;  %1024 = vmatmul.msk.f32.vlgmr.msra.gmra.mxu3 %vm200_vm0, %v1021_v49  ;;  %v1115_v56 = vunpack.i.h.bf16 %v1113_v54  ;;  %v1114_v57 = vunpack.i.l.bf16 %v1113_v54 }
  0x9d   : > { %v1120_v58 = vunpack.i.h.bf16 %v1118_v55  ;;  %v1119_v59 = vunpack.i.l.bf16 %v1118_v55 }
  0x9e   : > { %v670_v60 = vsel %vm669_vm6, %v1114_v57, %v1115_v56  ;;  %v671_v61 = vsel %vm669_vm6, %v1115_v56, %v1124_v53 }
  0x9f   : > { %v588_v63 = vsel %vm586_vm4, %v1110_v34, %v1119_v59  ;;  %694 = vmatpush.msra.mxu2 %v670_v60  ;;  %714 = vmatpush.msra.mxu3 %v671_v61  ;;  %v589_v0 = vsel %vm586_vm4, %v1119_v59, %v1120_v58 }
  0xa0   : > { %1020 = vmatmul.msk.f32.vlgmr.msra.gmra.mxu0 %vm200_vm0, %v1017_v37 }
  0xa1   : > { %1022 = vmatmul.msk.f32.vlgmr.msra.gmra.mxu1 %vm200_vm0, %v1021_v49  ;;  %631 = vmatpush.msra.mxu0 %v588_v63 }
  0xa2   : > { %1028 = vmatmul.msk.f32.vlgmr.msrb.gmra.mxu2 %vm200_vm0, %v1025_v62  ;;  %651 = vmatpush.msra.mxu1 %v589_v0 }
  0xa3   : > { %v1128_v5 = vpop.permute.xlu0 %1127 }
  0xa4   : > { %1030 = vmatmul.msk.f32.vlgmr.msrb.gmra.mxu3 %vm200_vm0, %v1029_v1  ;;  %v1133_v7 = vpop.permute.xlu1 %1132  ;;  %v1130_v8 = vunpack.i.h.bf16 %v1128_v5  ;;  %v1129_v9 = vunpack.i.l.bf16 %v1128_v5 }
  0xa5   : > { %v1135_v12 = vunpack.i.h.bf16 %v1133_v7  ;;  %v1134_v13 = vunpack.i.l.bf16 %v1133_v7 }
  0xa6   : > { %v754_v15 = vsel %vm752_vm7, %v1129_v9, %v1130_v8 }
  0xa7   : > { %v753_v17 = vsel %vm752_vm7, %v1134_v13, %v1129_v9  ;;  %797 = vmatpush.msrb.mxu2 %v754_v15  ;;  %v755_v18 = vsel %vm752_vm7, %v1130_v8, %v1135_v12 }
  0xa8   : > { %1026 = vmatmul.msk.f32.vlgmr.msrb.gmra.mxu0 %vm200_vm0, %v1025_v62  ;;  %817 = vmatpush.msrb.mxu3 %v755_v18 }
  0xa9   : > { %1027 = vmatmul.msk.f32.vlgmr.msrb.gmra.mxu1 %vm200_vm0, %v1025_v62  ;;  %734 = vmatpush.msrb.mxu0 %v672_v14 }
  0xaa   : > { %1034 = vmatmul.msk.f32.vlgmr.msra.gmra.mxu2 %vm200_vm0, %v1033_v16  ;;  %777 = vmatpush.msrb.mxu1 %v753_v17 }
  0xab   : > { %v1143_v20 = vpop.permute.xlu0 %1142  ;;  %900 = vmatpush.msra.mxu2 %v838_v19 }
  0xac   : > { %1035 = vmatmul.msk.f32.vlgmr.msra.gmra.mxu3 %vm200_vm0, %v1033_v16  ;;  %v1145_v21 = vunpack.i.h.bf16 %v1143_v20  ;;  %v1144_v22 = vunpack.i.l.bf16 %v1143_v20  ;;  %v912_v7 = vpop.permute.xlu1 %911 }
  0xae   : > { %v836_v23 = vsel %vm835_vm8, %v1144_v22, %v1145_v21  ;;  %v837_v25 = vsel %vm835_vm8, %v1145_v21, %v1139_v11 }
  0xb0   : > { %1031 = vmatmul.msk.f32.vlgmr.msra.gmra.mxu0 %vm200_vm0, %v1029_v1 }
  0xb1   : > { %1032 = vmatmul.msk.f32.vlgmr.msra.gmra.mxu1 %vm200_vm0, %v1029_v1  ;;  %860 = vmatpush.msra.mxu0 %v836_v23 }
  0xb2   : > { %1039 = vmatmul.msk.f32.vlgmr.msrb.gmra.mxu2 %vm200_vm0, %v1037_v24  ;;  %880 = vmatpush.msra.mxu1 %v837_v25 }
  0xb4   : > { %1040 = vmatmul.msk.f32.vlgmr.msrb.gmra.mxu3 %vm200_vm0, %v1037_v24 }
  0xb8   : > { %1036 = vmatmul.msk.f32.vlgmr.msrb.gmra.mxu0 %vm200_vm0, %v1033_v16 }
  0xb9   : > { %1038 = vmatmul.msk.f32.vlgmr.msrb.gmra.mxu1 %vm200_vm0, %v1037_v24 }
  0xba   : > { %1044 = vmatmul.msk.f32.vlgmr.msra.gmra.mxu2 %vm200_vm0, %v1041_v26 }
  0xc0   : > { %1042 = vmatmul.msk.f32.vlgmr.msra.gmra.mxu0 %vm200_vm0, %v1041_v26 }
  0xc1   : > { %1043 = vmatmul.msk.f32.vlgmr.msra.gmra.mxu1 %vm200_vm0, %v1041_v26 }
 0x10b   : > { %v261_v27 = vpop.f32.mrf.mxu2 }
 0x10d   : > { %v221_v28 = vpop.f32.mrf.mxu0 }
 0x10e   : > { %v241_v29 = vpop.f32.mrf.mxu1  ;;  %v285_v47 = vadd.f32 %v284_v30, %v221_v28 }
 0x115   : > { %v364_v31 = vpop.f32.mrf.mxu2  ;;  %v304_v32 = vpop.f32.mrf.mxu0 }
 0x116   : > { %v324_v33 = vpop.f32.mrf.mxu1  ;;  %v305_v44 = vadd.f32 %v304_v32, %v241_v29  ;;  %v407_v51 = vadd.f32 %v364_v31, %v285_v47 }
 0x117   : > { %v384_v34 = vpop.f32.mrf.mxu3  ;;  %v325_v43 = vadd.f32 %v324_v33, %v261_v27 }
 0x118   : > { %v408_v52 = vadd.f32 %v384_v34, %v305_v44 }
 0x11d   : > { %v467_v35 = vpop.f32.mrf.mxu2  ;;  %v404_v36 = vpop.f32.mrf.mxu0 }
 0x11e   : > { %v447_v37 = vpop.f32.mrf.mxu1  ;;  %v409_v48 = vadd.f32 %v404_v36, %v325_v43  ;;  %v491_v55 = vadd.f32 %v467_v35, %v408_v52 }
 0x11f   : > { %v487_v38 = vpop.f32.mrf.mxu3  ;;  %v490_v53 = vadd.f32 %v447_v37, %v407_v51 }
 0x120   : > { %v492_v54 = vadd.f32 %v487_v38, %v409_v48 }
 0x125   : > { %v570_v39 = vpop.f32.mrf.mxu2  ;;  %v530_v40 = vpop.f32.mrf.mxu0 }
 0x126   : > { %v550_v41 = vpop.f32.mrf.mxu1  ;;  %v575_v56 = vadd.f32 %v570_v39, %v492_v54  ;;  %v573_v57 = vadd.f32 %v530_v40, %v490_v53 }
 0x127   : > { %v613_v42 = vpop.f32.mrf.mxu3  ;;  %v574_v58 = vadd.f32 %v550_v41, %v491_v55 }
 0x128   : > { %v656_v0 = vadd.f32 %v613_v42, %v573_v57 }
 0x12d   : > { %v696_v45 = vpop.f32.mrf.mxu2  ;;  %v633_v46 = vpop.f32.mrf.mxu0 }
 0x12e   : > { %v653_v49 = vpop.f32.mrf.mxu1  ;;  %v657_v63 = vadd.f32 %v633_v46, %v574_v58  ;;  %v739_v3 = vadd.f32 %v696_v45, %v656_v0 }
 0x12f   : > { %v716_v50 = vpop.f32.mrf.mxu3  ;;  %v658_v61 = vadd.f32 %v653_v49, %v575_v56 }
 0x130   : > { %v740_v4 = vadd.f32 %v716_v50, %v657_v63 }
 0x135   : > { %v799_v59 = vpop.f32.mrf.mxu2  ;;  %v736_v60 = vpop.f32.mrf.mxu0 }
 0x136   : > { %v779_v62 = vpop.f32.mrf.mxu1  ;;  %v741_v1 = vadd.f32 %v736_v60, %v658_v61  ;;  %v823_v8 = vadd.f32 %v799_v59, %v740_v4 }
 0x137   : > { %v819_v2 = vpop.f32.mrf.mxu3  ;;  %v822_v5 = vadd.f32 %v779_v62, %v739_v3 }
 0x138   : > { %v824_v6 = vadd.f32 %v819_v2, %v741_v1 }
 0x13d   : > { %v902_v9 = vpop.f32.mrf.mxu2  ;;  %v862_v10 = vpop.f32.mrf.mxu0 }
 0x13e   : > { %v907_v11 = vadd.f32 %v902_v9, %v824_v6  ;;  %v905_v12 = vadd.f32 %v862_v10, %v822_v5  ;;  %v882_v13 = vpop.f32.mrf.mxu1 }
 0x13f   : > { %v906_v14 = vadd.f32 %v882_v13, %v823_v8 }
 0x140   : > { %v916_v15 = vadd.f32 %v912_v7, %v907_v11  ;;  %v914_v16 = vadd.f32 %v912_v7, %v905_v12 }
 0x141   : > { %v915_v17 = vadd.f32 %v912_v7, %v906_v14 }
 0x142   : > { %v919_v18 = vmul.f32 0.5, %v916_v15  ;;  %v917_v19 = vmul.f32 0.5, %v914_v16  ;;  %v922_v21 = vmul.f32 0.044715, %v916_v15  ;;  %v920_v23 = vmul.f32 0.044715, %v914_v16 }
 0x143   : > { %v918_v20 = vmul.f32 0.5, %v915_v17  ;;  %v921_v25 = vmul.f32 0.044715, %v915_v17 }
 0x144   : > { %v925_v22 = vmul.f32 %v919_v18, %v916_v15  ;;  %v923_v24 = vmul.f32 %v917_v19, %v914_v16 }
 0x145   : > { %v924_v26 = vmul.f32 %v918_v20, %v915_v17 }
 0x146   : > { %v928_v27 = vmul.f32 %v925_v22, %v922_v21  ;;  %v926_v28 = vmul.f32 %v923_v24, %v920_v23 }
 0x147   : > { %v927_v29 = vmul.f32 %v924_v26, %v921_v25 }
 0x148   : > { %v931_v30 = vadd.f32 %v928_v27, %v916_v15  ;;  %v929_v31 = vadd.f32 %v926_v28, %v914_v16 }
 0x149   : > { %v930_v32 = vadd.f32 %v927_v29, %v915_v17 }
 0x14a   : > { %v934_v33 = vmul.f32 0.7978846, %v931_v30  ;;  %v932_v34 = vmul.f32 0.7978846, %v929_v31 }
 0x14b   : > { %v933_v35 = vmul.f32 0.7978846, %v930_v32 }
 0x14c   : > { %1148 = vtanh.f32 %v934_v33 }
 0x14d   : > { %1150 = vtanh.f32 %v932_v34 }
 0x14e   : > { %1152 = vtanh.f32 %v933_v35 }
 0x152   : > { %v1149_v36 = vpop.eup %1148 }
 0x153   : > { %v1151_v37 = vpop.eup %1150  ;;  %v940_v38 = vadd.f32 1.0, %v1149_v36 }
 0x154   : > { %v1153_v39 = vpop.eup %1152  ;;  %v938_v40 = vadd.f32 1.0, %v1151_v37 }
 0x155   : > { %v943_v41 = vmul.f32 %v940_v38, %v919_v18  ;;  %v939_v42 = vadd.f32 1.0, %v1153_v39 }
 0x156   : > { %v941_v43 = vmul.f32 %v938_v40, %v917_v19 }
 0x157   : > { %946 = vst [vmem:[%s170_s24 + $0x10] sm:$0xff] %v943_v41  ;;  %v942_v44 = vmul.f32 %v939_v42, %v918_v20 }
 0x158   : > { %944 = vst [vmem:[%s170_s24] sm:$0xff] %v941_v43 }
 0x159   : > { %945 = vst [vmem:[%s170_s24 + $0x8] sm:$0xff] %v942_v44 }
 0x15a PF: > { %s13_s12 = sadd.s32 1, %s1160_s12  }
 0x15b   : > { %p10_p4 = scmp.ge.s32.totalorder %s13_s12, 4  }
 0x15d   :  { %12 = sbr.rel (!%p10_p4) target bundleno = 1 (0x1), region = 70 }

</bundles_post_ra>
